<compile_context>
chip_gen: v5e
topology: v5e:2x2
jax: 0.10.0
libtpu: 0.0.40
codegen_flags: <defaults>
</compile_context>

<pallas_src>
import jax
import jax.numpy as jnp
from jax import lax
from jax.experimental import pallas as pl
from jax.experimental.pallas import tpu as pltpu

TEMPERATURE = 0.07
EPS = 1e-12  # F.normalize eps (clamp norm at EPS == clamp squared norm at EPS*EPS)


def _round_up(x, m):
    return ((x + m - 1) // m) * m


def _make_kernel(n_valid_cols, total_rows, n_tiles):
    # Plain Python floats -> jaxpr literals, NOT captured device constants.
    inv_temp = float(1.0 / TEMPERATURE)
    inv_rows = float(1.0 / float(total_rows))
    eps_sq = float(EPS * EPS)

    def kernel(a_ref, pt_ref, m_ref, sim_ref, scalars_ref, pn_ref):
        i = pl.program_id(0)

        # ---- one-time init: normalize positives into persistent VMEM scratch ----
        @pl.when(i == 0)
        def _init():
            p_t = pt_ref[...].astype(jnp.float32)                    # (D, Pp)
            p_ss = jnp.sum(p_t * p_t, axis=0, keepdims=True)         # (1, Pp)
            pn_ref[...] = p_t * lax.rsqrt(jnp.maximum(p_ss, eps_sq))

        a = a_ref[...].astype(jnp.float32)                           # (TB, D)
        m = m_ref[...].astype(jnp.float32)                           # (TB, Pp)

        # ---- L2 normalize anchors (rsqrt-multiply) ----
        a_ss = jnp.sum(a * a, axis=1, keepdims=True)                 # (TB, 1)
        a_n = a * lax.rsqrt(jnp.maximum(a_ss, eps_sq))

        # ---- similarity on the MXU: (TB, D) @ (D, Pp) ----
        sim = jnp.dot(a_n, pn_ref[...],
                      preferred_element_type=jnp.float32) * inv_temp
        sim_ref[...] = sim                                           # lane-dense store

        tb, pp = sim.shape
        col_idx = lax.broadcasted_iota(jnp.int32, (tb, pp), 1)

        if n_valid_cols < pp:                                        # static branch
            col_valid = col_idx < n_valid_cols
            sim_m = jnp.where(col_valid, sim, -jnp.inf)
        else:
            col_valid = None
            sim_m = sim

        # ---- log_softmax along dim=1 ----
        row_max = jnp.max(sim_m, axis=1, keepdims=True)              # (TB, 1)
        shifted = sim_m - row_max
        lse = jnp.log(jnp.sum(jnp.exp(shifted), axis=1, keepdims=True))
        log_probs = shifted - lse
        if col_valid is not None:
            log_probs = jnp.where(col_valid, log_probs, 0.0)

        # ---- per-row multi-positive NLL (reduction='mean' over all rows) ----
        num_pos = jnp.sum(m, axis=1, keepdims=True)                  # (TB, 1)
        loss_row = -jnp.sum(m * log_probs, axis=1, keepdims=True)    # (TB, 1)
        block_loss = jnp.sum(loss_row / jnp.maximum(num_pos, 1.0))

        # ---- accuracy: mask value at argmax(similarity), rows with a positive ----
        is_max = sim_m == row_max
        argmax_idx = jnp.min(jnp.where(is_max, col_idx, pp),
                             axis=1, keepdims=True)                  # (TB, 1)
        mask_at_argmax = jnp.sum(jnp.where(col_idx == argmax_idx, m, 0.0),
                                 axis=1, keepdims=True)               # (TB, 1)
        correct = jnp.where(num_pos > 0.0,
                            (mask_at_argmax > 0.0).astype(jnp.float32),
                            0.0)
        block_correct = jnp.sum(correct)

        # ---- accumulate scalar sums across the B grid (no zero-init needed) ----
        @pl.when(i == 0)
        def _set():
            scalars_ref[0] = block_loss
            scalars_ref[1] = block_correct

        @pl.when(i > 0)
        def _acc():
            scalars_ref[0] = scalars_ref[0] + block_loss
            scalars_ref[1] = scalars_ref[1] + block_correct

        @pl.when(i == n_tiles - 1)
        def _finalize():
            scalars_ref[0] = scalars_ref[0] * inv_rows
            scalars_ref[1] = scalars_ref[1] * inv_rows

    return kernel


def multi_positive_loss(anchors, positives, positive_mask, *, tile_b=256):
    """anchors: (B, D), positives: (P, D), positive_mask: (B, P) (any dtype)."""
    B, D = anchors.shape
    P, Dp = positives.shape
    assert D == Dp

    # Lane-dense P; row-tiled B.
    P_pad = _round_up(P, 128)
    TILE_B = min(tile_b, _round_up(B, 8))
    B_pad = _round_up(B, TILE_B)
    n_tiles = B_pad // TILE_B

    a = anchors
    if B_pad != B:
        a = jnp.pad(a, ((0, B_pad - B), (0, 0)))
    p_t = positives.T                                  # (D, P) — MXU-natural (K, N)
    if P_pad != P:
        p_t = jnp.pad(p_t, ((0, 0), (0, P_pad - P)))
    m = positive_mask
    if (B_pad != B) or (P_pad != P):
        m = jnp.pad(m, ((0, B_pad - B), (0, P_pad - P)))

    # Explicit VMEM budget from the actual shapes (double-buffered inputs/outputs
    # + persistent normalized-positives scratch), capped under v7x 64 MiB VMEM.
    feat_bytes = a.dtype.itemsize
    mask_bytes = m.dtype.itemsize
    vmem_est = (2 * TILE_B * D * feat_bytes
                + 2 * D * P_pad * p_t.dtype.itemsize
                + 2 * TILE_B * P_pad * mask_bytes
                + 2 * TILE_B * P_pad * 4
                + D * P_pad * 4)
    vmem_limit = int(min(max(2 * vmem_est + (4 << 20), 32 << 20), 56 << 20))

    kernel = _make_kernel(P, B, n_tiles)

    sim_pad, scalars = pl.pallas_call(
        kernel,
        out_shape=(
            jax.ShapeDtypeStruct((B_pad, P_pad), jnp.float32),
            jax.ShapeDtypeStruct((2,), jnp.float32),
        ),
        grid=(n_tiles,),
        in_specs=[
            pl.BlockSpec((TILE_B, D), lambda i: (i, 0)),      # anchors row tile
            pl.BlockSpec((D, P_pad), lambda i: (0, 0)),       # positives^T (resident)
            pl.BlockSpec((TILE_B, P_pad), lambda i: (i, 0)),  # mask row tile
        ],
        out_specs=(
            pl.BlockSpec((TILE_B, P_pad), lambda i: (i, 0)),            # similarity
            pl.BlockSpec(memory_space=pltpu.MemorySpace.SMEM),          # (loss, acc)
        ),
        scratch_shapes=[pltpu.VMEM((D, P_pad), jnp.float32)],           # normalized P^T
        compiler_params=pltpu.CompilerParams(
            dimension_semantics=("arbitrary",),   # scalars accumulate across B tiles
            vmem_limit_bytes=vmem_limit,
        ),
    )(a, p_t, m)

    return {
        "loss": scalars[0],
        "accuracy": scalars[1],
        "similarity": sim_pad[:B, :P],
    }


def _reference(anchors, positives, positive_mask):
    a = anchors.astype(jnp.float32)
    p = positives.astype(jnp.float32)
    m = positive_mask.astype(jnp.float32)
    a = a / jnp.maximum(jnp.linalg.norm(a, axis=1, keepdims=True), EPS)
    p = p / jnp.maximum(jnp.linalg.norm(p, axis=1, keepdims=True), EPS)
    sim = (a @ p.T) / TEMPERATURE
    logp = jax.nn.log_softmax(sim, axis=1)
    loss_row = -jnp.sum(m * logp, axis=1)
    num_pos = jnp.sum(m, axis=1)
    loss = jnp.mean(loss_row / jnp.maximum(num_pos, 1.0))
    amax = jnp.argmax(sim, axis=1)
    correct = jnp.where(num_pos > 0,
                        jnp.take_along_axis(m, amax[:, None], axis=1)[:, 0] > 0,
                        False)
    acc = jnp.mean(correct.astype(jnp.float32))
    return {"loss": loss, "accuracy": acc, "similarity": sim}


if __name__ == "__main__":
    B, P, D = 8, 8, 32
    key = jax.random.PRNGKey(0)
    k1, k2, k3 = jax.random.split(key, 3)
    anchors = jax.random.normal(k1, (B, D), dtype=jnp.float32)
    positives = jax.random.normal(k2, (P, D), dtype=jnp.float32)
    # mask shipped as int8 (less DMA than f32); promoted in-kernel
    positive_mask = (jax.random.uniform(k3, (B, P)) < 0.3).astype(jnp.int8)

    out = multi_positive_loss(anchors, positives, positive_mask)
    jax.block_until_ready(out)

    assert out["similarity"].shape == (B, P)
    assert jnp.isfinite(out["loss"])
    assert jnp.isfinite(out["accuracy"])

    ref = _reference(anchors, positives, positive_mask)
    assert jnp.allclose(out["similarity"], ref["similarity"], rtol=1e-2, atol=1e-2)
    assert jnp.allclose(out["loss"], ref["loss"], rtol=1e-2, atol=1e-2)
    assert jnp.allclose(out["accuracy"], ref["accuracy"], rtol=1e-2, atol=1e-2)

    print("KERNEL_OK")
</pallas_src>

<mosaic_0001>
module attributes {stable_mosaic.version = 11 : i64} {
  func.func @kernel(%arg0: i32, %arg1: memref<8x32xf32, #tpu.memory_space<vmem>>, %arg2: memref<32x128xf32, #tpu.memory_space<vmem>>, %arg3: memref<8x128xi8, #tpu.memory_space<vmem>>, %arg4: memref<8x128xf32, #tpu.memory_space<vmem>>, %arg5: memref<2xf32, #tpu.memory_space<smem>>, %arg6: memref<32x128xf32, #tpu.memory_space<vmem>>) attributes {dimension_semantics = [#tpu.dimension_semantics<arbitrary>], iteration_bounds = array<i64: 1>, scalar_prefetch = 0 : i64, scratch_operands = 1 : i64, tpu.core_type = #tpu.core_type<tc>, window_params = [{transform_indices = @transform_0, window_bounds = array<i64: 8, 32>}, {pipeline_mode = #tpu.pipeline_mode<synchronous>, transform_indices = @transform_1, window_bounds = array<i64: 32, 128>}, {transform_indices = @transform_2, window_bounds = array<i64: 8, 128>}, {transform_indices = @transform_3, window_bounds = array<i64: 8, 128>}, {transform_indices = @transform_4, window_bounds = array<i64: 2>}]} {
    %c0_i32 = arith.constant 0 : i32
    %0 = arith.cmpi eq, %arg0, %c0_i32 : i32
    %1 = arith.extui %0 : i1 to i32
    %c0_i32_0 = arith.constant 0 : i32
    %2 = arith.cmpi ne, %1, %c0_i32_0 : i32
    scf.if %2 {
      %c0_33 = arith.constant 0 : index
      %c0_34 = arith.constant 0 : index
      %83 = vector.load %arg2[%c0_33, %c0_34] : memref<32x128xf32, #tpu.memory_space<vmem>>, vector<32x128xf32>
      %84 = arith.mulf %83, %83 : vector<32x128xf32>
      %cst_35 = arith.constant dense<0.000000e+00> : vector<128xf32>
      %85 = vector.multi_reduction <add>, %84, %cst_35 [0] : vector<32x128xf32> to vector<128xf32>
      %86 = vector.shape_cast %85 : vector<128xf32> to vector<1x128xf32>
      %cst_36 = arith.constant 1.000000e-24 : f32
      %87 = vector.broadcast %cst_36 : f32 to vector<1x128xf32>
      %88 = arith.maximumf %86, %87 : vector<1x128xf32>
      %89 = math.rsqrt %88 : vector<1x128xf32>
      %90 = vector.broadcast %89 : vector<1x128xf32> to vector<32x128xf32>
      %91 = arith.mulf %83, %90 : vector<32x128xf32>
      %c0_37 = arith.constant 0 : index
      %c0_38 = arith.constant 0 : index
      %92 = vector.load %arg6[%c0_37, %c0_38] : memref<32x128xf32, #tpu.memory_space<vmem>>, vector<32x128xf32>
      tpu.vector_store %arg6[%c0_37, %c0_38], %91 {strides = array<i32>} : memref<32x128xf32, #tpu.memory_space<vmem>>, vector<32x128xf32>,
    } else {
    }
    %c0 = arith.constant 0 : index
    %c0_1 = arith.constant 0 : index
    %3 = vector.load %arg1[%c0, %c0_1] : memref<8x32xf32, #tpu.memory_space<vmem>>, vector<8x32xf32>
    %c0_2 = arith.constant 0 : index
    %c0_3 = arith.constant 0 : index
    %4 = vector.load %arg3[%c0_2, %c0_3] : memref<8x128xi8, #tpu.memory_space<vmem>>, vector<8x128xi8>
    %5 = arith.sitofp %4 : vector<8x128xi8> to vector<8x128xf32>
    %6 = arith.mulf %3, %3 : vector<8x32xf32>
    %cst = arith.constant dense<0.000000e+00> : vector<8xf32>
    %7 = vector.multi_reduction <add>, %6, %cst [1] : vector<8x32xf32> to vector<8xf32>
    %8 = vector.shape_cast %7 : vector<8xf32> to vector<8x1xf32>
    %cst_4 = arith.constant 1.000000e-24 : f32
    %9 = vector.broadcast %cst_4 : f32 to vector<8x1xf32>
    %10 = arith.maximumf %8, %9 : vector<8x1xf32>
    %11 = math.rsqrt %10 : vector<8x1xf32>
    %12 = vector.broadcast %11 : vector<8x1xf32> to vector<8x32xf32>
    %13 = arith.mulf %3, %12 : vector<8x32xf32>
    %c0_5 = arith.constant 0 : index
    %c0_6 = arith.constant 0 : index
    %14 = vector.load %arg6[%c0_5, %c0_6] : memref<32x128xf32, #tpu.memory_space<vmem>>, vector<32x128xf32>
    %cst_7 = arith.constant dense<0.000000e+00> : vector<8x128xf32>
    %15 = tpu.matmul %13, %14, %cst_7 {dimension_numbers = #tpu.dot_dimension_numbers<[1], [0], [0], [1], [0, 0, 1, 1], [], []>} : vector<8x32xf32>, vector<32x128xf32>, vector<8x128xf32> -> vector<8x128xf32>
    %cst_8 = arith.constant 14.2857141 : f32
    %16 = vector.broadcast %cst_8 : f32 to vector<8x128xf32>
    %17 = arith.mulf %15, %16 : vector<8x128xf32>
    %c0_9 = arith.constant 0 : index
    %c0_10 = arith.constant 0 : index
    %18 = vector.load %arg4[%c0_9, %c0_10] : memref<8x128xf32, #tpu.memory_space<vmem>>, vector<8x128xf32>
    tpu.vector_store %arg4[%c0_9, %c0_10], %17 {strides = array<i32>} : memref<8x128xf32, #tpu.memory_space<vmem>>, vector<8x128xf32>,
    %19 = tpu.iota {dimensions = array<i32: 1>} : vector<8x128xi32>
    %c8_i32 = arith.constant 8 : i32
    %20 = vector.broadcast %c8_i32 : i32 to vector<8x128xi32>
    %21 = arith.cmpi slt, %19, %20 : vector<8x128xi32>
    %cst_11 = arith.constant 0xFF800000 : f32
    %22 = vector.broadcast %cst_11 : f32 to vector<8x128xf32>
    %23 = arith.select %21, %17, %22 : vector<8x128xi1>, vector<8x128xf32>
    %cst_12 = arith.constant dense<0xFF800000> : vector<8xf32>
    %24 = vector.multi_reduction <maximumf>, %23, %cst_12 [1] : vector<8x128xf32> to vector<8xf32>
    %25 = vector.shape_cast %24 : vector<8xf32> to vector<8x1xf32>
    %26 = vector.broadcast %25 : vector<8x1xf32> to vector<8x128xf32>
    %27 = arith.subf %23, %26 : vector<8x128xf32>
    %28 = math.exp %27 : vector<8x128xf32>
    %cst_13 = arith.constant dense<0.000000e+00> : vector<8xf32>
    %29 = vector.multi_reduction <add>, %28, %cst_13 [1] : vector<8x128xf32> to vector<8xf32>
    %30 = vector.shape_cast %29 : vector<8xf32> to vector<8x1xf32>
    %31 = math.log %30 : vector<8x1xf32>
    %32 = vector.broadcast %31 : vector<8x1xf32> to vector<8x128xf32>
    %33 = arith.subf %27, %32 : vector<8x128xf32>
    %cst_14 = arith.constant 0.000000e+00 : f32
    %34 = vector.broadcast %cst_14 : f32 to vector<8x128xf32>
    %35 = arith.select %21, %33, %34 : vector<8x128xi1>, vector<8x128xf32>
    %cst_15 = arith.constant dense<0.000000e+00> : vector<8xf32>
    %36 = vector.multi_reduction <add>, %5, %cst_15 [1] : vector<8x128xf32> to vector<8xf32>
    %37 = vector.shape_cast %36 : vector<8xf32> to vector<8x1xf32>
    %38 = arith.mulf %5, %35 : vector<8x128xf32>
    %cst_16 = arith.constant dense<0.000000e+00> : vector<8xf32>
    %39 = vector.multi_reduction <add>, %38, %cst_16 [1] : vector<8x128xf32> to vector<8xf32>
    %40 = vector.shape_cast %39 : vector<8xf32> to vector<8x1xf32>
    %cst_17 = arith.constant 0.000000e+00 : f32
    %41 = vector.broadcast %cst_17 : f32 to vector<8x1xf32>
    %42 = arith.subf %41, %40 : vector<8x1xf32>
    %cst_18 = arith.constant 1.000000e+00 : f32
    %43 = vector.broadcast %cst_18 : f32 to vector<8x1xf32>
    %44 = arith.maximumf %37, %43 : vector<8x1xf32>
    %45 = arith.divf %42, %44 : vector<8x1xf32>
    %46 = vector.shape_cast %45 : vector<8x1xf32> to vector<1x8x1xf32>
    %cst_19 = arith.constant dense<0.000000e+00> : vector<1xf32>
    %47 = vector.multi_reduction <add>, %46, %cst_19 [1, 2] : vector<1x8x1xf32> to vector<1xf32>
    %48 = vector.shape_cast %47 : vector<1xf32> to vector<1x1x1xf32>
    %49 = vector.extract %48[0, 0, 0] : f32 from vector<1x1x1xf32>
    %50 = vector.broadcast %25 : vector<8x1xf32> to vector<8x128xf32>
    %51 = arith.cmpf oeq, %23, %50 : vector<8x128xf32>
    %c128_i32 = arith.constant 128 : i32
    %52 = vector.broadcast %c128_i32 : i32 to vector<8x128xi32>
    %53 = arith.select %51, %19, %52 : vector<8x128xi1>, vector<8x128xi32>
    %cst_20 = arith.constant dense<2147483647> : vector<8xi32>
    %54 = vector.multi_reduction <minsi>, %53, %cst_20 [1] : vector<8x128xi32> to vector<8xi32>
    %55 = vector.shape_cast %54 : vector<8xi32> to vector<8x1xi32>
    %56 = vector.broadcast %55 : vector<8x1xi32> to vector<8x128xi32>
    %57 = arith.cmpi eq, %19, %56 : vector<8x128xi32>
    %cst_21 = arith.constant 0.000000e+00 : f32
    %58 = vector.broadcast %cst_21 : f32 to vector<8x128xf32>
    %59 = arith.select %57, %5, %58 : vector<8x128xi1>, vector<8x128xf32>
    %cst_22 = arith.constant dense<0.000000e+00> : vector<8xf32>
    %60 = vector.multi_reduction <add>, %59, %cst_22 [1] : vector<8x128xf32> to vector<8xf32>
    %61 = vector.shape_cast %60 : vector<8xf32> to vector<8x1xf32>
    %cst_23 = arith.constant 0.000000e+00 : f32
    %62 = vector.broadcast %cst_23 : f32 to vector<8x1xf32>
    %63 = arith.cmpf ogt, %37, %62 : vector<8x1xf32>
    %cst_24 = arith.constant 0.000000e+00 : f32
    %64 = vector.broadcast %cst_24 : f32 to vector<8x1xf32>
    %65 = arith.cmpf ogt, %61, %64 : vector<8x1xf32>
    %66 = arith.extui %65 : vector<8x1xi1> to vector<8x1xi32>
    %67 = arith.sitofp %66 : vector<8x1xi32> to vector<8x1xf32>
    %cst_25 = arith.constant 0.000000e+00 : f32
    %68 = vector.broadcast %cst_25 : f32 to vector<8x1xf32>
    %69 = arith.select %63, %67, %68 : vector<8x1xi1>, vector<8x1xf32>
    %70 = vector.shape_cast %69 : vector<8x1xf32> to vector<1x8x1xf32>
    %cst_26 = arith.constant dense<0.000000e+00> : vector<1xf32>
    %71 = vector.multi_reduction <add>, %70, %cst_26 [1, 2] : vector<1x8x1xf32> to vector<1xf32>
    %72 = vector.shape_cast %71 : vector<1xf32> to vector<1x1x1xf32>
    %73 = vector.extract %72[0, 0, 0] : f32 from vector<1x1x1xf32>
    %c0_i32_27 = arith.constant 0 : i32
    %74 = arith.cmpi eq, %arg0, %c0_i32_27 : i32
    %75 = arith.extui %74 : i1 to i32
    %c0_i32_28 = arith.constant 0 : i32
    %76 = arith.cmpi ne, %75, %c0_i32_28 : i32
    scf.if %76 {
      %c0_33 = arith.constant 0 : index
      %83 = memref.load %arg5[%c0_33] : memref<2xf32, #tpu.memory_space<smem>>
      memref.store %49, %arg5[%c0_33] : memref<2xf32, #tpu.memory_space<smem>>
      %c1 = arith.constant 1 : index
      %84 = memref.load %arg5[%c1] : memref<2xf32, #tpu.memory_space<smem>>
      memref.store %73, %arg5[%c1] : memref<2xf32, #tpu.memory_space<smem>>
    } else {
    }
    %c0_i32_29 = arith.constant 0 : i32
    %77 = arith.cmpi sgt, %arg0, %c0_i32_29 : i32
    %78 = arith.extui %77 : i1 to i32
    %c0_i32_30 = arith.constant 0 : i32
    %79 = arith.cmpi ne, %78, %c0_i32_30 : i32
    scf.if %79 {
      %c0_33 = arith.constant 0 : index
      %83 = memref.load %arg5[%c0_33] : memref<2xf32, #tpu.memory_space<smem>>
      %84 = arith.addf %83, %49 : f32
      %c0_34 = arith.constant 0 : index
      %85 = memref.load %arg5[%c0_34] : memref<2xf32, #tpu.memory_space<smem>>
      memref.store %84, %arg5[%c0_34] : memref<2xf32, #tpu.memory_space<smem>>
      %c1 = arith.constant 1 : index
      %86 = memref.load %arg5[%c1] : memref<2xf32, #tpu.memory_space<smem>>
      %87 = arith.addf %86, %73 : f32
      %c1_35 = arith.constant 1 : index
      %88 = memref.load %arg5[%c1_35] : memref<2xf32, #tpu.memory_space<smem>>
      memref.store %87, %arg5[%c1_35] : memref<2xf32, #tpu.memory_space<smem>>
    } else {
    }
    %c0_i32_31 = arith.constant 0 : i32
    %80 = arith.cmpi eq, %arg0, %c0_i32_31 : i32
    %81 = arith.extui %80 : i1 to i32
    %c0_i32_32 = arith.constant 0 : i32
    %82 = arith.cmpi ne, %81, %c0_i32_32 : i32
    scf.if %82 {
      %c0_33 = arith.constant 0 : index
      %83 = memref.load %arg5[%c0_33] : memref<2xf32, #tpu.memory_space<smem>>
      %cst_34 = arith.constant 1.250000e-01 : f32
      %84 = arith.mulf %83, %cst_34 : f32
      %c0_35 = arith.constant 0 : index
      %85 = memref.load %arg5[%c0_35] : memref<2xf32, #tpu.memory_space<smem>>
      memref.store %84, %arg5[%c0_35] : memref<2xf32, #tpu.memory_space<smem>>
      %c1 = arith.constant 1 : index
      %86 = memref.load %arg5[%c1] : memref<2xf32, #tpu.memory_space<smem>>
      %cst_36 = arith.constant 1.250000e-01 : f32
      %87 = arith.mulf %86, %cst_36 : f32
      %c1_37 = arith.constant 1 : index
      %88 = memref.load %arg5[%c1_37] : memref<2xf32, #tpu.memory_space<smem>>
      memref.store %87, %arg5[%c1_37] : memref<2xf32, #tpu.memory_space<smem>>
    } else {
    }
    return
  }
  func.func @transform_0(%arg0: i32) -> (i32, i32) {
    %c0_i32 = arith.constant 0 : i32
    %c0_i32_0 = arith.constant 0 : i32
    return %arg0, %c0_i32 : i32, i32
  }
  func.func @transform_1(%arg0: i32) -> (i32, i32) {
    %c0_i32 = arith.constant 0 : i32
    %c0_i32_0 = arith.constant 0 : i32
    %c0_i32_1 = arith.constant 0 : i32
    return %c0_i32, %c0_i32_0 : i32, i32
  }
  func.func @transform_2(%arg0: i32) -> (i32, i32) {
    %c0_i32 = arith.constant 0 : i32
    %c0_i32_0 = arith.constant 0 : i32
    return %arg0, %c0_i32 : i32, i32
  }
  func.func @transform_3(%arg0: i32) -> (i32, i32) {
    %c0_i32 = arith.constant 0 : i32
    %c0_i32_0 = arith.constant 0 : i32
    return %arg0, %c0_i32 : i32, i32
  }
  func.func @transform_4(%arg0: i32) -> i32 {
    %c0_i32 = arith.constant 0 : i32
    %c0_i32_0 = arith.constant 0 : i32
    return %c0_i32 : i32
  }
}

</mosaic_0001>

<bundles_post_ra>
// kernel: tpu_custom_call.1
= control target key start
LH: loop header
LB: loop body
LE: loop exit
PB: predicated region body
PF: predicated region fallthrough
CT: control target
= control target key end

     0   :  { %10 = vsyncpa [#allocation4], 0  ;;  %s491_s0 = inlined_call_operand.hbm [shape: f32[8,32], index: 0, kind: input, shape index: {}]   ;;  %s492_s1 = inlined_call_operand.hbm [shape: f32[32,128], index: 1, kind: input, shape index: {}]   ;;  %s493_s2 = inlined_call_operand.hbm [shape: s8[8,128], index: 2, kind: input, shape index: {}]   ;;  %s494_s3 = inlined_call_operand.hbm [shape: f32[8,128], index: 3, kind: output, shape index: {0}]   ;;  %s495_s4 = inlined_call_operand.hbm [shape: f32[2], index: 4, kind: output, shape index: {1}]  }
   0x1   :  { %11 = vsyncpa [#allocation8], 0 }
   0x2   :  { %12 = vsyncpa [#allocation5], 0  ;;  %s29_s17 = sshll.u32 %s492_s1, 4  ;;  %s30_s17 = int_to_ptr.hbm [resolvable:$true] %s29_s17 }
   0x3   :  { %13 = vsyncpa [#allocation6], 0  ;;  %s439_s18 = smov [#allocation7]   ;;  %s19_s22 = sshll.u32 %s491_s0, 4  ;;  %s20_s22 = int_to_ptr.hbm [resolvable:$true] %s19_s22 }
   0x4   :  { %s31_s19 = sshll.u32 %s439_s18, 4  ;;  %s440_s23 = smov 128   ;;  %s32_s19 = int_to_ptr.vmem [resolvable:$true] %s31_s19 }
   0x5   :  { %s441_s24 = smov 8   ;;  %s442_s25 = smov [#allocation3]  }
   0x6   :  { %37 = dma.hbm_to_vmem [thread:$0]  %s30_s17, 512, %s32_s19, [#allocation8], %s440_s23, %s440_s23, %s441_s24  }
   0x7   :  { %s21_s26 = sshll.u32 %s442_s25, 4  ;;  %s43_s29 = sshll.u32 %s493_s2, 4  ;;  %s22_s26 = int_to_ptr.vmem [resolvable:$true] %s21_s26  ;;  %s44_s29 = int_to_ptr.hbm [resolvable:$true] %s43_s29 }
   0x8   :  { %24 = dma.hbm_to_vmem [thread:$0]  %s20_s22, 128, %s22_s26, [#allocation4]  }
   0x9   :  { %s443_s1 = smov [#allocation9]  }
   0xa   :  { %s45_s30 = sshll.u32 %s443_s1, 4  ;;  %s46_s30 = int_to_ptr.vmem [resolvable:$true] %s45_s30 }
   0xb   :  { %48 = dma.hbm_to_vmem [thread:$0]  %s44_s29, 32, %s46_s30, [#allocation8]  }
   0xc   :  { %431 = dma.done.wait [#allocation4], 128  }
   0xd   :  { %432 = vsyncadd [#allocation4], 4294967168 }
   0xe   :  { %433 = dma.done.wait [#allocation8], 544  }
   0xf   :  { %434 = vsyncadd [#allocation8], 4294966752  ;;  %v101_v0 = vld [vmem:[#allocation3] sm:$0xff]  ;;  %vm106_vm0 = vcmask 261120   ;;  %v65_v3 = vld [vmem:[#allocation7] sm:$0xff]  ;;  %v151_v42 = vlaneseq  ;;  %vm188_vm15 = vcmask 7168  }
  0x10   :  { %v105_v1 = vmul.f32 %v101_v0, %v101_v0  ;;  %v66_v4 = vld [vmem:[#allocation7 + $0x8] sm:$0xff]  ;;  %v69_v5 = vmul.f32 %v65_v3, %v65_v3  ;;  %v67_v7 = vld [vmem:[#allocation7 + $0x10] sm:$0xff]  ;;  %v68_v10 = vld [vmem:[#allocation7 + $0x18] sm:$0xff]  ;;  %s445_s0 = smov [#allocation10]   ;;  %s271_s7 = sshll.u32 %s494_s3, 4  ;;  %s272_s7 = int_to_ptr.hbm [resolvable:$true] %s271_s7 }
  0x11   :  { %v70_v6 = vmul.f32 %v66_v4, %v66_v4  ;;  %v71_v8 = vmul.f32 %v67_v7, %v67_v7  ;;  %v72_v11 = vmul.f32 %v68_v10, %v68_v10  ;;  %v152_v43 = vand.u32 127, %v151_v42  ;;  %v102_v57 = vld [vmem:[#allocation9] sm:$0x3]  ;;  %s269_s2 = sshll.u32 %s445_s0, 4  ;;  %s280_s12 = sshll.u32 %s495_s4, 4  ;;  %s270_s2 = int_to_ptr.vmem [resolvable:$true] %s269_s2  ;;  %s281_s12 = int_to_ptr.hbm [resolvable:$true] %s280_s12 }
  0x12   :  { %v107_v2 = vsel %vm106_vm0, %v105_v1, 0.0  ;;  %v103_v59 = vunpack.c.0.s8 %v102_v57  ;;  %s446_s14 = smov [#allocation11]  }
  0x13   :  { %108 = vadd.xlane.f32.xlu0 %v107_v2  ;;  %v73_v9 = vadd.f32 %v70_v6, %v69_v5  ;;  %vm153_vm7 = vcmp.lt.s32.totalorder %v152_v43, 8 }
  0x14   :  { %v104_v60 = vcvt.s32.f32 %v103_v59 }
  0x15   :  { %v74_v12 = vadd.f32 %v73_v9, %v71_v8 }
  0x17   :  { %v75_v13 = vadd.f32 %v74_v12, %v72_v11 }
  0x19   :  { %v76_v14 = vrot.slane %v75_v13, 4 }
  0x1b   :  { %v77_v15 = vadd.f32 %v76_v14, %v75_v13 }
  0x1d   :  { %v78_v16 = vrot.slane %v77_v15, 2 }
  0x1f   :  { %v79_v17 = vadd.f32 %v78_v16, %v77_v15 }
  0x21   :  { %v80_v18 = vrot.slane %v79_v17, 1 }
  0x23   :  { %v81_v19 = vadd.f32 %v80_v18, %v79_v17 }
  0x25   :  { %v82_v20 = vmax.f32 %v81_v19, 1e-24 }
  0x27   :  { %313 = vrsqrt.f32 %v82_v20  ;;  %vm89_vm1 = vweird.f32 %v82_v20 }
  0x2d   :  { %v314_v21 = vpop.eup %313 }
  0x2e   :  { %v84_v22 = vmul.f32 %v314_v21, %v82_v20  ;;  %vm90_vm2 = vweird.f32 %v314_v21 }
  0x2f   :  { %vm91_vm3 = vmor %vm89_vm1, %vm90_vm2 }
  0x30   :  { %v85_v23 = vmul.f32 %v314_v21, %v84_v22 }
  0x32   :  { %v86_v24 = vmul.f32 0.5, %v85_v23 }
  0x34   :  { %v87_v25 = vsub.f32 1.5, %v86_v24 }
  0x36   :  { %v88_v26 = vmul.f32 %v314_v21, %v87_v25 }
  0x38   :  { %v92_v27 = vsel %vm91_vm3, %v314_v21, %v88_v26  ;;  %v444_v26 = vmov 0.0  }
  0x39   :  { %v96_v28 = vmul.f32 %v92_v27, %v68_v10  ;;  %v95_v29 = vmul.f32 %v92_v27, %v67_v7  ;;  %v94_v30 = vmul.f32 %v92_v27, %v66_v4  ;;  %v93_v31 = vmul.f32 %v92_v27, %v65_v3 }
  0x3b   :  { %141 = vmatpush.msra.mxu0 %v96_v28 }
  0x3d   :  { %142 = vmatpush.msra.mxu0 %v95_v29 }
  0x3f   :  { %143 = vmatpush.msra.mxu0 %v94_v30 }
  0x41   :  { %144 = vmatpush.msra.mxu0 %v93_v31 }
  0x86   :  { %v109_v32 = vpop.xlane.xlu0 %108 }
  0x87   :  { %v110_v33 = vmax.f32 %v109_v32, 1e-24 }
  0x89   :  { %315 = vrsqrt.f32 %v110_v33  ;;  %vm117_vm5 = vweird.f32 %v110_v33 }
  0x8f   :  { %v316_v34 = vpop.eup %315 }
  0x90   :  { %v112_v35 = vmul.f32 %v316_v34, %v110_v33  ;;  %vm118_vm4 = vweird.f32 %v316_v34 }
  0x91   :  { %vm119_vm6 = vmor %vm117_vm5, %vm118_vm4 }
  0x92   :  { %v113_v36 = vmul.f32 %v316_v34, %v112_v35 }
  0x94   :  { %v114_v37 = vmul.f32 0.5, %v113_v36 }
  0x96   :  { %v115_v38 = vsub.f32 1.5, %v114_v37 }
  0x98   :  { %v116_v39 = vmul.f32 %v316_v34, %v115_v38 }
  0x9a   :  { %v120_v40 = vsel %vm119_vm6, %v316_v34, %v116_v39 }
  0x9b   :  { %v121_v41 = vmul.f32 %v120_v40, %v101_v0 }
  0x9d   :  { %297 = vmatmul.msk.f32.vlgmr.msra.gmra.mxu0 %vm106_vm0, %v121_v41 }
 0x11a   :  { %v146_v44 = vpop.f32.mrf.mxu0 }
 0x11b   :  { %v149_v45 = vmul.f32 14.285714, %v146_v44 }
 0x11d   :  { %150 = vst [vmem:[#allocation10] sm:$0xff] %v149_v45  ;;  %v154_v46 = vsel %vm153_vm7, %v149_v45, -inf }
 0x11e   :  { %155 = vmax.xlane.f32.xlu0 %v154_v46  ;;  %274 = dma.vmem_to_hbm [thread:$0]  %s270_s2, 128, %s272_s7, [#allocation5]  }
 0x191   :  { %v156_v47 = vpop.xlane.xlu0 %155 }
 0x192   :  { %v157_v48 = vsub.f32 %v154_v46, %v156_v47  ;;  %vm199_vm8 = vcmp.eq.f32.partialorder %v154_v46, %v156_v47 }
 0x193   :  { %v200_v49 = vsel %vm199_vm8, %v152_v43, 128 }
 0x194   :  { %v202_v50 = vshra.s32 %v200_v49, 16  ;;  %v158_v51 = vmul.f32 1.442695, %v157_v48  ;;  %v201_v54 = vand.u32 65535, %v200_v49 }
 0x196   :  { %v204_v52 = vcvt.s32.f32 %v202_v50  ;;  %317 = vpow2.f32 %v158_v51  ;;  %v203_v56 = vcvt.s32.f32 %v201_v54 }
 0x198   :  { %205 = vmin.xlane.f32.xlu1 %v204_v52 }
 0x19c   :  { %v318_v53 = vpop.eup %317 }
 0x1a0   :  { %160 = vadd.xlane.f32.xlu1 %v318_v53 }
 0x20b   :  { %v206_v55 = vpop.xlane.xlu1 %205 }
 0x20c   :  { %vm207_vm9 = vcmp.eq.f32.partialorder %v204_v52, %v206_v55  ;;  %v212_v3 = vcvt.f32.s32 %v206_v55 }
 0x20d   :  { %v208_v58 = vsel %vm207_vm9, %v203_v56, inf }
 0x20e   :  { %209 = vmin.xlane.f32.xlu2 %v208_v58  ;;  %v213_v5 = vshll.u32 %v212_v3, 16 }
 0x213   :  { %v161_v61 = vpop.xlane.xlu1 %160 }
 0x214   :  { %319 = vlog2.f32 %v161_v61 }
 0x216   :  { %166 = vadd.xlane.f32.xlu2 %v104_v60 }
 0x21a   :  { %v320_v62 = vpop.eup %319 }
 0x21b   :  { %v163_v63 = vmul.f32 0.6931472, %v320_v62 }
 0x21d   :  { %v164_v0 = vsub.f32 %v157_v48, %v163_v63 }
 0x21f   :  { %v165_v1 = vsel %vm153_vm7, %v164_v0, 0.0 }
 0x220   :  { %v168_v2 = vmul.f32 %v165_v1, %v104_v60 }
 0x222   :  { %169 = vadd.xlane.f32.xlu0 %v168_v2 }
 0x281   :  { %v210_v4 = vpop.xlane.xlu2 %209 }
 0x282   :  { %v211_v6 = vcvt.f32.s32 %v210_v4 }
 0x284   :  { %v214_v7 = vadd.s32 %v213_v5, %v211_v6 }
 0x286   :  { %vm215_vm10 = vcmp.eq.s32.totalorder %v152_v43, %v214_v7 }
 0x287   :  { %v216_v8 = vsel %vm215_vm10, %v104_v60, 0.0 }
 0x288   :  { %217 = vadd.xlane.f32.xlu1 %v216_v8 }
 0x289   :  { %v167_v9 = vpop.xlane.xlu2 %166 }
 0x28a   :  { %v172_v10 = vmax.f32 %v167_v9, 1.0  ;;  %vm219_vm1 = vcmp.gt.f32.partialorder %v167_v9, 0.0 }
 0x28c   :  { %321 = vrcp.f32 %v172_v10  ;;  %v184_v13 = vand.u32 2147483648, %v172_v10  ;;  %vm178_vm11 = vweird.f32 %v172_v10  ;;  %v182_v15 = vand.u32 2147483647, %v172_v10 }
 0x28e   :  { %v185_v18 = vor.u32 1.1754944e-38, %v184_v13  ;;  %vm183_vm14 = vcmp.eq.f32.partialorder %v182_v15, 8.507059e+37 }
 0x292   :  { %v322_v11 = vpop.eup %321 }
 0x293   :  { %v174_v12 = vmul.f32 %v322_v11, %v172_v10  ;;  %vm179_vm12 = vweird.f32 %v322_v11 }
 0x294   :  { %vm180_vm13 = vmor %vm178_vm11, %vm179_vm12 }
 0x295   :  { %v175_v14 = vsub.f32 1.0, %v174_v12  ;;  %v170_v17 = vpop.xlane.xlu0 %169 }
 0x296   :  { %v171_v20 = vsub.f32 0.0, %v170_v17 }
 0x297   :  { %v176_v16 = vmul.f32 %v322_v11, %v175_v14 }
 0x299   :  { %v177_v19 = vadd.f32 %v322_v11, %v176_v16 }
 0x29b   :  { %v181_v21 = vsel %vm180_vm13, %v322_v11, %v177_v19 }
 0x29c   :  { %v186_v22 = vsel %vm183_vm14, %v185_v18, %v181_v21 }
 0x29d   :  { %v187_v23 = vmul.f32 %v186_v22, %v171_v20 }
 0x29f   :  { %v189_v24 = vsel %vm188_vm15, %v187_v23, 0.0 }
 0x2a0   :  { %190 = vadd.xlane.f32.xlu2 %v189_v24 }
 0x2fb   :  { %v218_v25 = vpop.xlane.xlu1 %217 }
 0x2fc   :  { %vm220_vm0 = vcmp.gt.f32.partialorder %v218_v25, 0.0 }
 0x2fd   :  { %v298_v27 = vsel %vm220_vm0, 1.0, %v444_v26 }
 0x2fe   :  { %v223_v28 = vsel %vm219_vm1, %v298_v27, 0.0 }
 0x2ff   :  { %v224_v29 = vsel %vm188_vm15, %v223_v28, 0.0 }
 0x300   :  { %225 = vadd.xlane.f32.xlu0 %v224_v29 }
 0x313   :  { %v191_v30 = vpop.xlane.xlu2 %190 }
 0x314   :  { %v192_v31 = vrot.slane %v191_v30, 4 }
 0x316   :  { %v193_v32 = vadd.f32 %v192_v31, %v191_v30 }
 0x318   :  { %v194_v33 = vrot.slane %v193_v32, 2 }
 0x31a   :  { %v195_v34 = vadd.f32 %v194_v33, %v193_v32 }
 0x31c   :  { %v196_v35 = vrot.slane %v195_v34, 1 }
 0x31e   :  { %v197_v36 = vadd.f32 %v196_v35, %v195_v34 }
 0x320   :  { %301 = vpush %v197_v36 }
 0x351   :  { %s302_s8 = spop %301 }
 0x352   :  { %s257_s9 = smul.f32 0.125, %s302_s8 }
 0x354   :  { %259 = sst [smem:[#allocation11]] %s257_s9 }
 0x373   :  { %v226_v37 = vpop.xlane.xlu0 %225 }
 0x374   :  { %v227_v38 = vrot.slane %v226_v37, 4 }
 0x376   :  { %v228_v39 = vadd.f32 %v227_v38, %v226_v37 }
 0x378   :  { %v229_v40 = vrot.slane %v228_v39, 2 }
 0x37a   :  { %v230_v41 = vadd.f32 %v229_v40, %v228_v39 }
 0x37c   :  { %v231_v42 = vrot.slane %v230_v41, 1 }
 0x37e   :  { %v232_v43 = vadd.f32 %v231_v42, %v230_v41 }
 0x380   :  { %303 = vpush %v232_v43 }
 0x3b1   :  { %s304_s13 = spop %303 }
 0x3b2   :  { %s261_s3 = smul.f32 0.125, %s304_s13 }
 0x3b4   :  { %263 = sst [smem:[#allocation11 + $0x1]] %s261_s3 }
 0x3b5   :  { %283 = dma.smem_to_hbm %s446_s14, 16, %s281_s12, [#allocation6]  }
 0x3b6   :  { %435 = dma.done.wait [#allocation5], 128  }
 0x3b7   :  { %436 = vsyncadd [#allocation5], 4294967168 }
 0x3b8   :  { %437 = dma.done.wait [#allocation6], 16  }
 0x3b9   :  { %438 = vsyncadd [#allocation6], 4294967280 }
 0x3ba   :  { %292 = sfence }
 0x3bb   :  { %293 = vsyncpa [#allocation4], 1 }
 0x3bc   :  { %294 = vsyncpa [#allocation8], 1 }
 0x3bd   :  { %295 = vsyncpa [#allocation5], 1 }
 0x3be   :  { %296 = vsyncpa [#allocation6], 1 }

</bundles_post_ra>
